<compile_context>
chip_gen: v7x
topology: tpu7x:2x2x1
jax: 0.10.0
libtpu: 0.0.40
codegen_flags: <defaults>
</compile_context>

<pallas_src>
from functools import partial

import numpy as np
import jax
import jax.numpy as jnp
from jax.experimental import pallas as pl
from jax.experimental.pallas import tpu as pltpu


# ----------------------------------------------------------------------------
# tiling helpers (all static / trace-time Python)
# ----------------------------------------------------------------------------
def _round_up(x, m):
    return (x + m - 1) // m * m


def _row_tile(m, target):
    """Return (padded_rows, row_tile). Full-dim (8-aligned) block when small;
    divisor tile when big; bounded-tile padding as a last resort."""
    target = max(8, target)
    if m <= target:
        mp = _round_up(m, 8)
        return mp, mp
    t = (min(target, m) // 8) * 8
    while t >= 8:
        if m % t == 0:
            return m, t
        t -= 8
    t0 = (target // 8) * 8
    return _round_up(m, t0), t0


def _col_tile(n):
    """Output-column tiling for GEMM (padding allowed, not needed for this net)."""
    if n <= 256:
        return n, n
    for t in (256, 128):
        if n % t == 0:
            return n, t
    return _round_up(n, 128), 128


def _chan_tile(c):
    """Channel tiling for elementwise/reduction kernels (never pads)."""
    if c <= 256:
        return c
    for t in (256, 128):
        if c % t == 0:
            return t
    return c


# ----------------------------------------------------------------------------
# Pallas kernels
# ----------------------------------------------------------------------------
def _mm_kernel(*refs, act, epilogue):
    """out = epilogue( relu(a*scale+shift) @ b , residual ). bf16 MXU, f32 accumulate."""
    idx = 0
    a_ref = refs[idx]; idx += 1
    if act:
        s_ref = refs[idx]; t_ref = refs[idx + 1]; idx += 2
    b_ref = refs[idx]; idx += 1
    r_ref = refs[idx] if epilogue is not None else None
    o_ref = refs[-1]

    a = a_ref[...]
    if act:
        a = jnp.maximum(a.astype(jnp.float32) * s_ref[...] + t_ref[...], 0.0)
    acc = jnp.dot(a.astype(jnp.bfloat16), b_ref[...].astype(jnp.bfloat16),
                  preferred_element_type=jnp.float32)
    if epilogue == "add":
        acc = acc + r_ref[...]
    elif epilogue == "mask":
        acc = (1.0 + jax.nn.sigmoid(acc)) * r_ref[...]
    o_ref[...] = acc


def _moments_kernel(x_ref, o_ref):
    # accumulates [sum(x); sum(x*x)] per channel across the M-grid axis (last axis)
    @pl.when(pl.program_id(1) == 0)
    def _init():
        o_ref[...] = jnp.zeros_like(o_ref)
    x = x_ref[...]
    s = jnp.sum(x, axis=0, keepdims=True)
    sq = jnp.sum(x * x, axis=0, keepdims=True)
    o_ref[...] += jnp.concatenate([s, sq], axis=0)


def _affine_relu_kernel(x_ref, s_ref, t_ref, o_ref):
    o_ref[...] = jnp.maximum(x_ref[...] * s_ref[...] + t_ref[...], 0.0)


def _add2_kernel(a_ref, b_ref, o_ref):
    o_ref[...] = a_ref[...] + b_ref[...]


def _add3_kernel(a_ref, b_ref, c_ref, o_ref):
    o_ref[...] = a_ref[...] + b_ref[...] + c_ref[...]


def _max_kernel(x_ref, o_ref):
    o_ref[...] = jnp.max(x_ref[...], axis=0).astype(jnp.float32)


def _avgpool_kernel(x_ref, s_ref, t_ref, o_ref):
    # per-sample: sum over rows of relu(x*s + t); s,t already carry the 1/(H*W) factor
    @pl.when(pl.program_id(2) == 0)
    def _init():
        o_ref[...] = jnp.zeros_like(o_ref)
    y = jnp.maximum(x_ref[0] * s_ref[...] + t_ref[...], 0.0)
    o_ref[...] += jnp.sum(y, axis=0, keepdims=True)


# ----------------------------------------------------------------------------
# pallas_call wrappers (invoked inside jitted ops below)
# ----------------------------------------------------------------------------
def _pallas_matmul(a, b, scale=None, shift=None, residual=None, epilogue=None):
    M, K = a.shape
    Kb, N = b.shape
    assert K == Kb
    act = scale is not None

    Kp = _round_up(K, 8)                      # only triggers for K=147 / 28 / 14 / 7
    if Kp != K:
        a = jnp.pad(a, ((0, 0), (0, Kp - K)))
        b = jnp.pad(b, ((0, Kp - K), (0, 0)))
        if act:
            scale = jnp.pad(scale, (0, Kp - K))
            shift = jnp.pad(shift, (0, Kp - K))

    Mp, tm = _row_tile(M, 512)
    Np, tn = _col_tile(N)
    if Mp != M:
        a = jnp.pad(a, ((0, Mp - M), (0, 0)))
        if residual is not None:
            residual = jnp.pad(residual, ((0, Mp - M), (0, 0)))
    if Np != N:
        b = jnp.pad(b, ((0, 0), (0, Np - N)))
        if residual is not None:
            residual = jnp.pad(residual, ((0, 0), (0, Np - N)))

    inputs = [a]
    in_specs = [pl.BlockSpec((tm, Kp), lambda i, j: (i, 0))]
    if act:
        inputs += [scale.reshape(1, Kp).astype(jnp.float32),
                   shift.reshape(1, Kp).astype(jnp.float32)]
        in_specs += [pl.BlockSpec((1, Kp), lambda i, j: (0, 0)),
                     pl.BlockSpec((1, Kp), lambda i, j: (0, 0))]
    inputs.append(b)
    in_specs.append(pl.BlockSpec((Kp, tn), lambda i, j: (0, j)))
    if epilogue is not None:
        inputs.append(residual)
        in_specs.append(pl.BlockSpec((tm, tn), lambda i, j: (i, j)))

    out = pl.pallas_call(
        partial(_mm_kernel, act=act, epilogue=epilogue),
        out_shape=jax.ShapeDtypeStruct((Mp, Np), jnp.float32),
        grid=(Mp // tm, Np // tn),
        in_specs=in_specs,
        out_specs=pl.BlockSpec((tm, tn), lambda i, j: (i, j)),
        compiler_params=pltpu.CompilerParams(
            dimension_semantics=("parallel", "parallel")),
    )(*inputs)
    if Mp != M or Np != N:
        out = out[:M, :N]
    return out


def _pallas_moments(x2d):
    M, C = x2d.shape
    tmax = max(256, min(4096, (1 << 21) // (4 * C) // 8 * 8))
    Mp, tm = _row_tile(M, tmax)
    tc = _chan_tile(C)
    if Mp != M:
        x2d = jnp.pad(x2d, ((0, Mp - M), (0, 0)))          # zero rows: no effect on sums
    out = pl.pallas_call(
        _moments_kernel,
        out_shape=jax.ShapeDtypeStruct((2, C), jnp.float32),
        grid=(C // tc, Mp // tm),
        in_specs=[pl.BlockSpec((tm, tc), lambda c, m: (m, c))],
        out_specs=pl.BlockSpec((2, tc), lambda c, m: (0, c)),
        compiler_params=pltpu.CompilerParams(
            dimension_semantics=("parallel", "arbitrary")),
    )(x2d)
    mean = out[0] / M
    ex2 = out[1] / M
    return mean, ex2


def _ew_call(kernel_fn, arrays, bcast):
    full = [a for a, f in zip(arrays, bcast) if not f]
    M, C = full[0].shape
    tmax = max(256, min(8192, (1 << 20) // (4 * C) // 8 * 8))
    Mp, tm = _row_tile(M, tmax)
    tc = _chan_tile(C)
    inputs, specs = [], []
    for a, f in zip(arrays, bcast):
        if f:
            inputs.append(a.reshape(1, C).astype(jnp.float32))
            specs.append(pl.BlockSpec((1, tc), lambda m, c: (0, c)))
        else:
            if Mp != M:
                a = jnp.pad(a, ((0, Mp - M), (0, 0)))
            inputs.append(a)
            specs.append(pl.BlockSpec((tm, tc), lambda m, c: (m, c)))
    out = pl.pallas_call(
        kernel_fn,
        out_shape=jax.ShapeDtypeStruct((Mp, C), jnp.float32),
        grid=(Mp // tm, C // tc),
        in_specs=specs,
        out_specs=pl.BlockSpec((tm, tc), lambda m, c: (m, c)),
        compiler_params=pltpu.CompilerParams(
            dimension_semantics=("parallel", "parallel")),
    )(*inputs)
    return out[:M] if Mp != M else out


def _pallas_max(stacked):
    K9, M, C = stacked.shape
    tmax = max(256, min(4096, (2 << 20) // (2 * K9 * C) // 8 * 8))
    Mp, tm = _row_tile(M, tmax)
    tc = _chan_tile(C)
    if Mp != M:
        stacked = jnp.pad(stacked, ((0, 0), (0, Mp - M), (0, 0)),
                          constant_values=-1e30)
    out = pl.pallas_call(
        _max_kernel,
        out_shape=jax.ShapeDtypeStruct((Mp, C), jnp.float32),
        grid=(Mp // tm, C // tc),
        in_specs=[pl.BlockSpec((K9, tm, tc), lambda m, c: (0, m, c))],
        out_specs=pl.BlockSpec((tm, tc), lambda m, c: (m, c)),
        compiler_params=pltpu.CompilerParams(
            dimension_semantics=("parallel", "parallel")),
    )(stacked)
    return out[:M] if Mp != M else out


# ----------------------------------------------------------------------------
# jitted NN ops (glue: padding / im2col / reshapes; compute: Pallas)
# ----------------------------------------------------------------------------
@jax.jit
def _bn_scale_shift(x, gamma, beta):
    """Training-mode BatchNorm2d statistics -> per-channel (scale, shift), eps=1e-5."""
    C = x.shape[-1]
    mean, ex2 = _pallas_moments(x.reshape(-1, C))
    var = jnp.maximum(ex2 - mean * mean, 0.0)
    scale = gamma * jax.lax.rsqrt(var + 1e-5)
    shift = beta - mean * scale
    return scale, shift


def _im2col(x, kh, kw, stride, padding):
    # TODO(synk): the kh*kw patch gather stays XLA glue; a fused halo-DMA conv kernel
    # (9 accumulating dots over shifted A windows) is left for a follow-up.
    N, H, W, C = x.shape
    OH = (H + 2 * padding - kh) // stride + 1
    OW = (W + 2 * padding - kw) // stride + 1
    xp = jnp.pad(x, ((0, 0), (padding, padding), (padding, padding), (0, 0)))
    cols = []
    for di in range(kh):
        for dj in range(kw):
            cols.append(xp[:, di:di + stride * (OH - 1) + 1:stride,
                              dj:dj + stride * (OW - 1) + 1:stride, :])
    patches = jnp.concatenate(cols, axis=-1)          # (kh,kw,cin) channel ordering
    return patches.reshape(N * OH * OW, kh * kw * C), OH, OW


@partial(jax.jit, static_argnames=("kh", "kw", "stride", "padding"))
def conv_plain(x, w2d, *, kh, kw, stride=1, padding=0):
    """Bias-free conv (matches nn.Conv2d(bias=False)), no preceding BN."""
    N = x.shape[0]
    cout = w2d.shape[1]
    if kh == 1 and kw == 1:
        if stride > 1:
            x = x[:, ::stride, ::stride, :]
        OH, OW = x.shape[1], x.shape[2]
        a = x.reshape(-1, x.shape[-1])
    else:
        a, OH, OW = _im2col(x.astype(jnp.bfloat16), kh, kw, stride, padding)
    out = _pallas_matmul(a, w2d)
    return out.reshape(N, OH, OW, cout)


@partial(jax.jit, static_argnames=("kh", "kw", "stride", "padding"))
def conv_bn(x, w2d, scale, shift, *, kh, kw, stride=1, padding=0):
    """conv( relu( bn(x) ) ): BN affine + ReLU fused into the GEMM (1x1) or into the
    bf16 im2col materialization (k>1, so activation precedes the conv's zero padding)."""
    N = x.shape[0]
    cout = w2d.shape[1]
    if kh == 1 and kw == 1:
        if stride > 1:
            x = x[:, ::stride, ::stride, :]
        OH, OW = x.shape[1], x.shape[2]
        a = x.reshape(-1, x.shape[-1])
        out = _pallas_matmul(a, w2d, scale=scale, shift=shift)
    else:
        xa = jnp.maximum(x * scale + shift, 0.0).astype(jnp.bfloat16)
        a, OH, OW = _im2col(xa, kh, kw, stride, padding)
        out = _pallas_matmul(a, w2d)
    return out.reshape(N, OH, OW, cout)


@partial(jax.jit, static_argnames=("epilogue",))
def conv1x1_bn_res(x, w2d, scale, shift, residual, *, epilogue):
    """1x1 conv of relu(bn(x)) with a fused epilogue:
       'add'  -> out = conv + residual          (bottleneck shortcut add)
       'mask' -> out = (1 + sigmoid(conv)) * residual   (attention mask apply)."""
    N, H, W, _ = x.shape
    cout = w2d.shape[1]
    a = x.reshape(N * H * W, -1)
    r = residual.reshape(N * H * W, cout)
    out = _pallas_matmul(a, w2d, scale=scale, shift=shift,
                         residual=r, epilogue=epilogue)
    return out.reshape(N, H, W, cout)


@jax.jit
def affine_relu(x, scale, shift):
    shp = x.shape
    C = shp[-1]
    out = _ew_call(_affine_relu_kernel, [x.reshape(-1, C), scale, shift],
                   [False, True, True])
    return out.reshape(shp)


@jax.jit
def add2(a, b):
    shp = a.shape
    C = shp[-1]
    out = _ew_call(_add2_kernel, [a.reshape(-1, C), b.reshape(-1, C)],
                   [False, False])
    return out.reshape(shp)


@jax.jit
def add3(a, b, c):
    shp = a.shape
    C = shp[-1]
    out = _ew_call(_add3_kernel,
                   [a.reshape(-1, C), b.reshape(-1, C), c.reshape(-1, C)],
                   [False, False, False])
    return out.reshape(shp)


@jax.jit
def maxpool2d(x):
    """MaxPool2d(kernel_size=3, stride=2, padding=1) on NHWC."""
    # TODO(synk): the 3x3/stride-2 window gather is XLA glue (built in bf16 to halve its
    # HBM traffic); a fully fused halo-DMA Pallas pool is left for a follow-up.
    N, H, W, C = x.shape
    OH = (H - 1) // 2 + 1
    OW = (W - 1) // 2 + 1
    xb = x.astype(jnp.bfloat16)
    xp = jnp.pad(xb, ((0, 0), (1, 1), (1, 1), (0, 0)), constant_values=-1e30)
    cols = []
    for di in range(3):
        for dj in range(3):
            cols.append(xp[:, di:di + 2 * (OH - 1) + 1:2,
                              dj:dj + 2 * (OW - 1) + 1:2, :].reshape(N * OH * OW, C))
    stacked = jnp.stack(cols, axis=0)
    out = _pallas_max(stacked)
    return out.reshape(N, OH, OW, C)


@jax.jit
def final_bn_avgpool(x, gamma, beta):
    """BatchNorm2d + ReLU + AvgPool2d(7) (global mean), fused into one batched reduction."""
    N, H, W, C = x.shape
    mean, ex2 = _pallas_moments(x.reshape(-1, C))
    var = jnp.maximum(ex2 - mean * mean, 0.0)
    scale = gamma * jax.lax.rsqrt(var + 1e-5)
    shift = beta - mean * scale
    inv = 1.0 / (H * W)                       # relu is positively homogeneous
    s = (scale * inv).reshape(1, C).astype(jnp.float32)
    t = (shift * inv).reshape(1, C).astype(jnp.float32)
    M = H * W
    Mp, tm = _row_tile(M, max(64, min(2048, (1 << 20) // (4 * C) // 8 * 8)))
    tc = _chan_tile(C)
    x3 = x.reshape(N, M, C)
    if Mp != M:
        x3 = jnp.pad(x3, ((0, 0), (0, Mp - M), (0, 0)))
    out = pl.pallas_call(
        _avgpool_kernel,
        out_shape=jax.ShapeDtypeStruct((N, C), jnp.float32),
        grid=(N, C // tc, Mp // tm),
        in_specs=[pl.BlockSpec((1, tm, tc), lambda n, c, m: (n, m, c)),
                  pl.BlockSpec((1, tc), lambda n, c, m: (0, c)),
                  pl.BlockSpec((1, tc), lambda n, c, m: (0, c))],
        out_specs=pl.BlockSpec((1, tc), lambda n, c, m: (n, c)),
        compiler_params=pltpu.CompilerParams(
            dimension_semantics=("parallel", "parallel", "arbitrary")),
    )(x3, s, t)
    if Mp != M:
        # padded (zero) rows each contributed relu(t); remove that contribution
        out = out - (Mp - M) * jnp.maximum(t[0], 0.0)[None, :]
    return out


@jax.jit
def linear(x, w2d, bias):
    M = x.shape[0]
    r = jnp.broadcast_to(bias[None, :].astype(jnp.float32), (M, w2d.shape[1]))
    return _pallas_matmul(x, w2d, residual=r, epilogue="add")


# bilinear upsample (align_corners=True), done as two Pallas matmuls -----------
_interp_cache = {}


def _interp_matrix(n_out, n_in):
    key = (n_out, n_in)
    if key not in _interp_cache:
        pos = np.arange(n_out, dtype=np.float64) * (n_in - 1) / (n_out - 1)
        i0 = np.clip(np.floor(pos).astype(np.int64), 0, n_in - 1)
        i1 = np.minimum(i0 + 1, n_in - 1)
        w1 = (pos - i0).astype(np.float32)
        w0 = 1.0 - w1
        m = np.zeros((n_out, n_in), np.float32)
        m[np.arange(n_out), i0] += w0
        m[np.arange(n_out), i1] += w1
        _interp_cache[key] = jnp.asarray(m)
    return _interp_cache[key]


@jax.jit
def _upsample_apply(x, wh, ww):
    N, h, w, C = x.shape
    H = wh.shape[0]
    W = ww.shape[0]
    xt = jnp.transpose(x, (1, 0, 2, 3)).reshape(h, N * w * C)
    y = _pallas_matmul(wh, xt).reshape(H, N, w, C)
    yt = jnp.transpose(y, (2, 1, 0, 3)).reshape(w, N * H * C)
    z = _pallas_matmul(ww, yt).reshape(W, N, H, C)
    return jnp.transpose(z, (1, 2, 0, 3))


def upsample_bilinear(x, out_h, out_w):
    return _upsample_apply(x, _interp_matrix(out_h, x.shape[1]),
                           _interp_matrix(out_w, x.shape[2]))


# ----------------------------------------------------------------------------
# parameter construction (deterministic, synthetic)
# ----------------------------------------------------------------------------
class KeyGen:
    def __init__(self, key):
        self.key = key

    def __call__(self):
        self.key, sub = jax.random.split(self.key)
        return sub


def conv_init(key, kh, kw, cin, cout):
    fan_in = kh * kw * cin
    w = jax.random.normal(key, (kh, kw, cin, cout), jnp.float32) / np.sqrt(fan_in)
    # weights pre-reshaped once to the (K, cout) GEMM layout and stored in bf16
    return w.reshape(kh * kw * cin, cout).astype(jnp.bfloat16)


def bn_init(c):
    return (jnp.ones((c,), jnp.float32), jnp.zeros((c,), jnp.float32))


def make_rb(kg, cin, cout, stride=1):
    mid = cout // 4
    p = {
        "bn1": bn_init(cin),
        "conv1": conv_init(kg(), 1, 1, cin, mid),
        "bn2": bn_init(mid),
        "conv2": conv_init(kg(), 3, 3, mid, mid),
        "bn3": bn_init(mid),
        "conv3": conv_init(kg(), 1, 1, mid, cout),
        "stride": stride,
    }
    if cin != cout or stride != 1:
        p["conv4"] = conv_init(kg(), 1, 1, cin, cout)
    return p


def make_mask_head(kg, c):
    return {"bn1": bn_init(c), "conv1": conv_init(kg(), 1, 1, c, c),
            "bn2": bn_init(c), "conv2": conv_init(kg(), 1, 1, c, c)}


def make_attn1(kg, c):
    return {"first": make_rb(kg, c, c),
            "trunk": [make_rb(kg, c, c), make_rb(kg, c, c)],
            "sm1": make_rb(kg, c, c), "skip1": make_rb(kg, c, c),
            "sm2": make_rb(kg, c, c), "skip2": make_rb(kg, c, c),
            "sm3": [make_rb(kg, c, c), make_rb(kg, c, c)],
            "sm4": make_rb(kg, c, c), "sm5": make_rb(kg, c, c),
            "mask": make_mask_head(kg, c),
            "last": make_rb(kg, c, c)}


def make_attn2(kg, c):
    return {"first": make_rb(kg, c, c),
            "trunk": [make_rb(kg, c, c), make_rb(kg, c, c)],
            "sm1": make_rb(kg, c, c), "skip1": make_rb(kg, c, c),
            "sm2": [make_rb(kg, c, c), make_rb(kg, c, c)],
            "sm3": make_rb(kg, c, c),
            "mask": make_mask_head(kg, c),
            "last": make_rb(kg, c, c)}


def make_attn3(kg, c):
    return {"first": make_rb(kg, c, c),
            "trunk": [make_rb(kg, c, c), make_rb(kg, c, c)],
            "sm1": [make_rb(kg, c, c), make_rb(kg, c, c)],
            "mask": make_mask_head(kg, c),
            "last": make_rb(kg, c, c)}


def make_params(kg):
    p = {}
    p["conv1_w"] = conv_init(kg(), 7, 7, 3, 64)
    p["bn1"] = bn_init(64)
    p["rb1"] = make_rb(kg, 64, 256)
    p["attn1"] = make_attn1(kg, 256)
    p["rb2"] = make_rb(kg, 256, 512, 2)
    p["attn2"] = make_attn2(kg, 512)
    p["attn2_2"] = make_attn2(kg, 512)
    p["rb3"] = make_rb(kg, 512, 1024, 2)
    p["attn3"] = make_attn3(kg, 1024)
    p["attn3_2"] = make_attn3(kg, 1024)
    p["attn3_3"] = make_attn3(kg, 1024)
    p["rb4"] = make_rb(kg, 1024, 2048, 2)
    p["rb5"] = make_rb(kg, 2048, 2048)
    p["rb6"] = make_rb(kg, 2048, 2048)
    p["bn_final"] = bn_init(2048)
    p["fc_w"] = (jax.random.normal(kg(), (2048, 10), jnp.float32)
                 / np.sqrt(2048)).astype(jnp.bfloat16)
    p["fc_b"] = jnp.zeros((10,), jnp.float32)
    return p


# ----------------------------------------------------------------------------
# model forward (pre-activation bottleneck + attention modules)
# ----------------------------------------------------------------------------
def residual_block(x, p):
    stride = p["stride"]
    s1, b1 = _bn_scale_shift(x, *p["bn1"])
    out = conv_bn(x, p["conv1"], s1, b1, kh=1, kw=1)                        # 1x1
    s2, b2 = _bn_scale_shift(out, *p["bn2"])
    out = conv_bn(out, p["conv2"], s2, b2, kh=3, kw=3,
                  stride=stride, padding=1)                                  # 3x3
    s3, b3 = _bn_scale_shift(out, *p["bn3"])
    if "conv4" in p:
        # conv4 consumes relu(bn1(x)) (the pre-activation), matching the PyTorch block
        residual = conv_bn(x, p["conv4"], s1, b1, kh=1, kw=1, stride=stride)
    else:
        residual = x
    # 1x1 conv3 with the shortcut add fused into the GEMM epilogue
    return conv1x1_bn_res(out, p["conv3"], s3, b3, residual, epilogue="add")


def mask_apply(x, p, trunk):
    # BN-ReLU-Conv1x1-BN-ReLU-Conv1x1-Sigmoid, then (1 + mask) * trunk (fused epilogue)
    s1, b1 = _bn_scale_shift(x, *p["bn1"])
    y = conv_bn(x, p["conv1"], s1, b1, kh=1, kw=1)
    s2, b2 = _bn_scale_shift(y, *p["bn2"])
    return conv1x1_bn_res(y, p["conv2"], s2, b2, trunk, epilogue="mask")


def attention_stage1(x, p):
    x = residual_block(x, p["first"])
    t = residual_block(residual_block(x, p["trunk"][0]), p["trunk"][1])
    m1 = maxpool2d(x)
    s1 = residual_block(m1, p["sm1"])
    skip1 = residual_block(s1, p["skip1"])
    m2 = maxpool2d(s1)
    s2 = residual_block(m2, p["sm2"])
    skip2 = residual_block(s2, p["skip2"])
    m3 = maxpool2d(s2)
    s3 = residual_block(residual_block(m3, p["sm3"][0]), p["sm3"][1])
    out = add3(upsample_bilinear(s3, s2.shape[1], s2.shape[2]), s2, skip2)
    s4 = residual_block(out, p["sm4"])
    out = add3(upsample_bilinear(s4, s1.shape[1], s1.shape[2]), s1, skip1)
    s5 = residual_block(out, p["sm5"])
    i1 = add2(upsample_bilinear(s5, t.shape[1], t.shape[2]), t)
    out = mask_apply(i1, p["mask"], t)
    return residual_block(out, p["last"])


def attention_stage2(x, p):
    x = residual_block(x, p["first"])
    t = residual_block(residual_block(x, p["trunk"][0]), p["trunk"][1])
    m1 = maxpool2d(x)
    s1 = residual_block(m1, p["sm1"])
    skip1 = residual_block(s1, p["skip1"])
    m2 = maxpool2d(s1)
    s2 = residual_block(residual_block(m2, p["sm2"][0]), p["sm2"][1])
    out = add3(upsample_bilinear(s2, s1.shape[1], s1.shape[2]), s1, skip1)
    s3 = residual_block(out, p["sm3"])
    i1 = add2(upsample_bilinear(s3, t.shape[1], t.shape[2]), t)
    out = mask_apply(i1, p["mask"], t)
    return residual_block(out, p["last"])


def attention_stage3(x, p):
    x = residual_block(x, p["first"])
    t = residual_block(residual_block(x, p["trunk"][0]), p["trunk"][1])
    m1 = maxpool2d(x)
    s1 = residual_block(residual_block(m1, p["sm1"][0]), p["sm1"][1])
    i1 = add2(upsample_bilinear(s1, t.shape[1], t.shape[2]), t)
    out = mask_apply(i1, p["mask"], t)
    return residual_block(out, p["last"])


def forward(params, x_nchw):
    # layout: NCHW input (PyTorch) -> NHWC for all Pallas compute
    assert x_nchw.shape[1] == 3 and x_nchw.shape[2] == 224 and x_nchw.shape[3] == 224, \
        "Attention-92 forward (fixed interp sizes + AvgPool(7)) implies 3x224x224 input"
    x = jnp.transpose(x_nchw, (0, 2, 3, 1)).astype(jnp.float32)

    out = conv_plain(x, params["conv1_w"], kh=7, kw=7, stride=2, padding=3)
    s, b = _bn_scale_shift(out, *params["bn1"])
    out = affine_relu(out, s, b)
    out = maxpool2d(out)
    out = residual_block(out, params["rb1"])
    out = attention_stage1(out, params["attn1"])
    out = residual_block(out, params["rb2"])
    out = attention_stage2(out, params["attn2"])
    out = attention_stage2(out, params["attn2_2"])
    out = residual_block(out, params["rb3"])
    out = attention_stage3(out, params["attn3"])
    out = attention_stage3(out, params["attn3_2"])
    out = attention_stage3(out, params["attn3_3"])
    out = residual_block(out, params["rb4"])
    out = residual_block(out, params["rb5"])
    out = residual_block(out, params["rb6"])
    feat = final_bn_avgpool(out, *params["bn_final"])        # [N, 2048]
    logits = linear(feat, params["fc_w"], params["fc_b"])    # [N, 10]
    return logits


# ----------------------------------------------------------------------------
if __name__ == "__main__":
    root = jax.random.PRNGKey(0)
    k_param, k_input = jax.random.split(root)

    params = make_params(KeyGen(k_param))
    # smallest input the forward pass admits: batch=1, 3x224x224
    x = jax.random.normal(k_input, (1, 3, 224, 224), jnp.float32)

    logits = forward(params, x)
    logits = jax.block_until_ready(logits)
    assert logits.shape == (1, 10)
    assert bool(jnp.all(jnp.isfinite(logits)))
    print("KERNEL_OK")
</pallas_src>

<mosaic_0001>
module attributes {stable_mosaic.version = 11 : i64} {
  func.func @_mm_kernel(%arg0: i32, %arg1: i32, %arg2: memref<448x152xbf16, #tpu.memory_space<vmem>>, %arg3: memref<152x64xbf16, #tpu.memory_space<vmem>>, %arg4: memref<448x64xf32, #tpu.memory_space<vmem>>) attributes {dimension_semantics = [#tpu.dimension_semantics<parallel>, #tpu.dimension_semantics<parallel>], iteration_bounds = array<i64: 28, 1>, scalar_prefetch = 0 : i64, scratch_operands = 0 : i64, tpu.core_type = #tpu.core_type<tc>, window_params = [{transform_indices = @transform_0, window_bounds = array<i64: 448, 152>}, {transform_indices = @transform_1, window_bounds = array<i64: 152, 64>}, {transform_indices = @transform_2, window_bounds = array<i64: 448, 64>}]} {
    %c0 = arith.constant 0 : index
    %c0_0 = arith.constant 0 : index
    %0 = vector.load %arg2[%c0, %c0_0] : memref<448x152xbf16, #tpu.memory_space<vmem>>, vector<448x152xbf16>
    %c0_1 = arith.constant 0 : index
    %c0_2 = arith.constant 0 : index
    %1 = vector.load %arg3[%c0_1, %c0_2] : memref<152x64xbf16, #tpu.memory_space<vmem>>, vector<152x64xbf16>
    %cst = arith.constant dense<0.000000e+00> : vector<448x64xf32>
    %2 = tpu.matmul %0, %1, %cst {dimension_numbers = #tpu.dot_dimension_numbers<[1], [0], [0], [1], [0, 0, 1, 1], [], []>} : vector<448x152xbf16>, vector<152x64xbf16>, vector<448x64xf32> -> vector<448x64xf32>
    %c0_3 = arith.constant 0 : index
    %c0_4 = arith.constant 0 : index
    %3 = vector.load %arg4[%c0_3, %c0_4] : memref<448x64xf32, #tpu.memory_space<vmem>>, vector<448x64xf32>
    tpu.vector_store %arg4[%c0_3, %c0_4], %2 {strides = array<i32>} : memref<448x64xf32, #tpu.memory_space<vmem>>, vector<448x64xf32>,
    return
  }
  func.func @transform_0(%arg0: i32, %arg1: i32) -> (i32, i32) {
    %c0_i32 = arith.constant 0 : i32
    %c0_i32_0 = arith.constant 0 : i32
    return %arg0, %c0_i32 : i32, i32
  }
  func.func @transform_1(%arg0: i32, %arg1: i32) -> (i32, i32) {
    %c0_i32 = arith.constant 0 : i32
    %c0_i32_0 = arith.constant 0 : i32
    return %c0_i32, %arg1 : i32, i32
  }
  func.func @transform_2(%arg0: i32, %arg1: i32) -> (i32, i32) {
    %c0_i32 = arith.constant 0 : i32
    return %arg0, %arg1 : i32, i32
  }
}

</mosaic_0001>

<bundles_post_ra>
// kernel: conv_plain.1
= control target key start
LH: loop header
LB: loop body
LE: loop exit
PB: predicated region body
PF: predicated region fallthrough
CT: control target
= control target key end

     0   :  { %s1350_s9 = smov 0   ;;  %s1352_s10 = smov 0   ;;  %s1620_s0 = inlined_call_operand.vmem [shape: bf16[12544,152], index: 0, kind: input, shape index: {}]   ;;  %s1621_s1 = inlined_call_operand.vmem [shape: bf16[152,64], index: 1, kind: input, shape index: {}]   ;;  %s1622_s2 = inlined_call_operand.vmem [shape: f32[12544,64], index: 2, kind: output, shape index: {}]  }
   0x1   :  { %s1354_s11 = smov 0  }
   0x2 LB: > { %s24_s12 = sadd.s32 1, %s1328_s10  ;;  %p1070_p0 = scmp.ge.s32.totalorder %s1332_s11, 1  ;;  %s1332_s11 = sphi %s1354_s11, %s12_s11   ;;  %s1328_s10 = sphi %s1352_s10, %s1624_s10   ;;  %s1324_s9 = sphi %s1350_s9, %s1623_s9  }
   0x3   : > { %p26_p1 = scmp.ge.s32.totalorder %s24_s12, 28  ;;  %p137_p2 = scmp.lt.s32.totalorder %s1332_s11, 29 }
   0x5   : > { %s1626_s12 = smov (%p26_p1, %s24_s12), 0  ;;  %p138_p3 = pnand %p1070_p0, %p137_p2 }
   0x6   : > { %v1216_v0 = vld [vmem:[%s1621_s1] sm:$0xff] (!%p138_p3)   ;;  %v1334_v1 = vmov (!%p138_p3), 0   ;;  %v1217_v2 = vld [vmem:[%s1621_s1 + $0x8] sm:$0xff] (!%p138_p3)   ;;  %s167_s17 = smul.u32 (!%p138_p3), 56, %s1324_s9  ;;  %v1218_v3 = vld [vmem:[%s1621_s1 + $0x10] sm:$0xff] (!%p138_p3)   ;;  %vm572_vm0 = vcmask (!%p138_p3), 195584  }
   0x7   : > { %141 = sbr.rel (%p138_p3) target bundleno = 366 (0x16e), region = 28  ;;  %661 = vmatprep.subr.bf16.mxu0 (!%p138_p3), %v1334_v1  ;;  %1171 = vmatprep.subr.bf16.mxu1 (!%p138_p3), %v1334_v1  ;;  %v1219_v4 = vld [vmem:[%s1621_s1 + $0x18] sm:$0xff] (!%p138_p3)   ;;  %v1220_v7 = vld [vmem:[%s1621_s1 + $0x20] sm:$0xff] (!%p138_p3)   ;;  %v1221_v8 = vld [vmem:[%s1621_s1 + $0x28] sm:$0xff] (!%p138_p3)   ;;  %vm657_vm1 = vcmask (!%p138_p3), 1043456   ;;  %vm918_vm2 = vcmask (!%p138_p3), 523264  }
   0x8   : > { %662 = vmatpush1.bf16.msra.mxu0 (!%p138_p3), %v1216_v0  ;;  %1181 = vmatpush1.bf16.msra.mxu1 (!%p138_p3), %v1216_v0  ;;  %p168_p4 = scmp.lt.s32.totalorder (!%p138_p3), %s167_s17, 1567  ;;  %v1222_v9 = vld [vmem:[%s1621_s1 + $0x30] sm:$0xff] (!%p138_p3)   ;;  %v1223_v10 = vld [vmem:[%s1621_s1 + $0x38] sm:$0xff] (!%p138_p3)   ;;  %v1224_v11 = vld [vmem:[%s1621_s1 + $0x40] sm:$0xff] (!%p138_p3)  }
   0x9   : > { %663 = vmatprep.subr.bf16.mxu0 (!%p138_p3), %v1334_v1  ;;  %1172 = vmatprep.subr.bf16.mxu1 (!%p138_p3), %v1334_v1  ;;  %v1225_v12 = vld [vmem:[%s1621_s1 + $0x48] ss:$0 sps:$4 sm:$0xff] (!%p138_p3)  }
   0xa   : > { %v659_v13 = vsel (!%p138_p3), %vm657_vm1, %v1225_v12, 0 }
   0xc   : > { %664 = vmatpush1.bf16.msra.mxu0 (!%p138_p3), %v1217_v2  ;;  %1182 = vmatpush1.bf16.msra.mxu1 (!%p138_p3), %v1217_v2 }
   0xd   : > { %665 = vmatprep.subr.bf16.mxu0 (!%p138_p3), %v1334_v1  ;;  %1173 = vmatprep.subr.bf16.mxu1 (!%p138_p3), %v1334_v1 }
   0xe   : > { %s1628_s17 = smov (!%p168_p4, %s167_s17), 1567 }
   0xf   : > { %s1170_s20 = sshll.u32 %s1628_s17, 3 }
  0x10   : > { %s1385_s23 = scalar_lea.vmem %s1620_s0, %s1170_s20  ;;  %666 = vmatpush1.bf16.msra.mxu0 %v1218_v3  ;;  %1183 = vmatpush1.bf16.msra.mxu1 %v1218_v3  ;;  %s1497_s15 = scalar_lea.vmem %s1622_s2, %s1170_s20 }
  0x11   : > { %667 = vmatprep.subr.bf16.mxu0 %v1334_v1  ;;  %1174 = vmatprep.subr.bf16.mxu1 %v1334_v1  ;;  %v1228_v5 = vld [vmem:[%s1385_s23 + $0x4] ss:$8 sps:$4 sm:$0xff]   ;;  %v1226_v14 = vld [vmem:[%s1385_s23] ss:$8 sps:$4 sm:$0xff]   ;;  %v1232_v16 = vld [vmem:[%s1385_s23 + $0x14] ss:$8 sps:$4 sm:$0xff]  }
  0x12   : > { %v1231_v6 = vld [vmem:[%s1385_s23 + $0xe4] ss:$8 sps:$4 sm:$0xff]   ;;  %1140 = vmatprep.mubr.msk.bf16.mxu0 %vm572_vm0, %v1228_v5  ;;  %v1229_v15 = vld [vmem:[%s1385_s23 + $0xe0] ss:$8 sps:$4 sm:$0xff]   ;;  %v1234_v17 = vld [vmem:[%s1385_s23 + $0xf4] ss:$8 sps:$4 sm:$0xff]  }
  0x13   : > { %1154 = vmatprep.mubr.msk.bf16.mxu1 %vm572_vm0, %v1231_v6  ;;  %v1236_v18 = vld [vmem:[%s1385_s23 + $0x10] ss:$8 sps:$4 sm:$0xff]   ;;  %v1238_v20 = vld [vmem:[%s1385_s23 + $0x24] ss:$8 sps:$4 sm:$0xff]   ;;  %v1242_v22 = vld [vmem:[%s1385_s23 + $0x20] ss:$8 sps:$4 sm:$0xff]  }
  0x14   : > { %668 = vmatpush1.bf16.msra.mxu0 %v1219_v4  ;;  %1184 = vmatpush1.bf16.msra.mxu1 %v1219_v4  ;;  %v1237_v19 = vld [vmem:[%s1385_s23 + $0xf0] ss:$8 sps:$4 sm:$0xff]   ;;  %v1240_v21 = vld [vmem:[%s1385_s23 + $0x104] ss:$8 sps:$4 sm:$0xff]   ;;  %v1243_v23 = vld [vmem:[%s1385_s23 + $0x100] ss:$8 sps:$4 sm:$0xff]  }
  0x15   : > { %669 = vmatprep.subr.bf16.mxu0 %v1334_v1  ;;  %1175 = vmatprep.subr.bf16.mxu1 %v1334_v1  ;;  %v1244_v24 = vld [vmem:[%s1385_s23 + $0x34] ss:$8 sps:$4 sm:$0xff]   ;;  %v1248_v26 = vld [vmem:[%s1385_s23 + $0x30] ss:$8 sps:$4 sm:$0xff]   ;;  %v1250_v28 = vld [vmem:[%s1385_s23 + $0x44] ss:$8 sps:$4 sm:$0xff]  }
  0x16   : > { %v1246_v25 = vld [vmem:[%s1385_s23 + $0x114] ss:$8 sps:$4 sm:$0xff]   ;;  %v1249_v27 = vld [vmem:[%s1385_s23 + $0x110] ss:$8 sps:$4 sm:$0xff]   ;;  %v1252_v29 = vld [vmem:[%s1385_s23 + $0x124] ss:$8 sps:$4 sm:$0xff]  }
  0x17   : > { %v1254_v30 = vld [vmem:[%s1385_s23 + $0x40] ss:$8 sps:$4 sm:$0xff]   ;;  %v1256_v32 = vld [vmem:[%s1385_s23 + $0x54] ss:$8 sps:$4 sm:$0xff]   ;;  %v1260_v34 = vld [vmem:[%s1385_s23 + $0x50] ss:$8 sps:$4 sm:$0xff]  }
  0x18   : > { %670 = vmatpush1.bf16.msra.mxu0 %v1220_v7  ;;  %1185 = vmatpush1.bf16.msra.mxu1 %v1220_v7  ;;  %v1255_v31 = vld [vmem:[%s1385_s23 + $0x120] ss:$8 sps:$4 sm:$0xff]   ;;  %v1258_v33 = vld [vmem:[%s1385_s23 + $0x134] ss:$8 sps:$4 sm:$0xff]   ;;  %v1261_v35 = vld [vmem:[%s1385_s23 + $0x130] ss:$8 sps:$4 sm:$0xff]  }
  0x19   : > { %671 = vmatprep.subr.bf16.mxu0 %v1334_v1  ;;  %1176 = vmatprep.subr.bf16.mxu1 %v1334_v1  ;;  %v1262_v36 = vld [vmem:[%s1385_s23 + $0x64] ss:$8 sps:$4 sm:$0xff]   ;;  %v1266_v38 = vld [vmem:[%s1385_s23 + $0x60] ss:$8 sps:$4 sm:$0xff]   ;;  %v1268_v40 = vld [vmem:[%s1385_s23 + $0x74] ss:$8 sps:$4 sm:$0xff]  }
  0x1a   : > { %v1264_v37 = vld [vmem:[%s1385_s23 + $0x144] ss:$8 sps:$4 sm:$0xff]   ;;  %v1267_v39 = vld [vmem:[%s1385_s23 + $0x140] ss:$8 sps:$4 sm:$0xff]   ;;  %v1270_v41 = vld [vmem:[%s1385_s23 + $0x154] ss:$8 sps:$4 sm:$0xff]  }
  0x1b   : > { %v1272_v42 = vld [vmem:[%s1385_s23 + $0x70] ss:$8 sps:$4 sm:$0xff]   ;;  %v1274_v44 = vld [vmem:[%s1385_s23 + $0x84] ss:$8 sps:$4 sm:$0xff]   ;;  %v1278_v46 = vld [vmem:[%s1385_s23 + $0x80] ss:$8 sps:$4 sm:$0xff]  }
  0x1c   : > { %672 = vmatpush1.bf16.msra.mxu0 %v1221_v8  ;;  %1186 = vmatpush1.bf16.msra.mxu1 %v1221_v8  ;;  %v1273_v43 = vld [vmem:[%s1385_s23 + $0x150] ss:$8 sps:$4 sm:$0xff]   ;;  %v1276_v45 = vld [vmem:[%s1385_s23 + $0x164] ss:$8 sps:$4 sm:$0xff]   ;;  %v1279_v47 = vld [vmem:[%s1385_s23 + $0x160] ss:$8 sps:$4 sm:$0xff]  }
  0x1d   : > { %673 = vmatprep.subr.bf16.mxu0 %v1334_v1  ;;  %1177 = vmatprep.subr.bf16.mxu1 %v1334_v1  ;;  %v1280_v48 = vld [vmem:[%s1385_s23 + $0x94] ss:$8 sps:$4 sm:$0xff]   ;;  %v1284_v50 = vld [vmem:[%s1385_s23 + $0x90] ss:$8 sps:$4 sm:$0xff]   ;;  %v1286_v52 = vld [vmem:[%s1385_s23 + $0xa4] ss:$8 sps:$4 sm:$0xff]  }
  0x1e   : > { %v1282_v49 = vld [vmem:[%s1385_s23 + $0x174] ss:$8 sps:$4 sm:$0xff]   ;;  %v1285_v51 = vld [vmem:[%s1385_s23 + $0x170] ss:$8 sps:$4 sm:$0xff]   ;;  %v1288_v53 = vld [vmem:[%s1385_s23 + $0x184] ss:$8 sps:$4 sm:$0xff]  }
  0x1f   : > { %v1290_v54 = vld [vmem:[%s1385_s23 + $0xa0] ss:$8 sps:$4 sm:$0xff]   ;;  %v1292_v56 = vld [vmem:[%s1385_s23 + $0xb4] ss:$8 sps:$4 sm:$0xff]   ;;  %v1296_v58 = vld [vmem:[%s1385_s23 + $0xb0] ss:$8 sps:$4 sm:$0xff]  }
  0x20   : > { %674 = vmatpush1.bf16.msra.mxu0 %v1222_v9  ;;  %1187 = vmatpush1.bf16.msra.mxu1 %v1222_v9  ;;  %v1291_v55 = vld [vmem:[%s1385_s23 + $0x180] ss:$8 sps:$4 sm:$0xff]   ;;  %v1294_v57 = vld [vmem:[%s1385_s23 + $0x194] ss:$8 sps:$4 sm:$0xff]   ;;  %v1297_v59 = vld [vmem:[%s1385_s23 + $0x190] ss:$8 sps:$4 sm:$0xff]  }
  0x21   : > { %675 = vmatprep.subr.bf16.mxu0 %v1334_v1  ;;  %1178 = vmatprep.subr.bf16.mxu1 %v1334_v1  ;;  %v1298_v60 = vld [vmem:[%s1385_s23 + $0xc4] ss:$8 sps:$4 sm:$0xff]   ;;  %v1302_v62 = vld [vmem:[%s1385_s23 + $0xc0] ss:$8 sps:$4 sm:$0xff]   ;;  %v1304_v0 = vld [vmem:[%s1385_s23 + $0xd4] ss:$8 sps:$4 sm:$0xff]  }
  0x22   : > { %v1300_v61 = vld [vmem:[%s1385_s23 + $0x1a4] ss:$8 sps:$4 sm:$0xff]   ;;  %v1303_v63 = vld [vmem:[%s1385_s23 + $0x1a0] ss:$8 sps:$4 sm:$0xff]   ;;  %v1308_v2 = vld [vmem:[%s1385_s23 + $0xd0] ss:$8 sps:$4 sm:$0xff]  }
  0x23   : > { %v1309_v3 = vld [vmem:[%s1385_s23 + $0x1b0] ss:$8 sps:$4 sm:$0xff]  }
  0x24   : > { %676 = vmatpush1.bf16.msra.mxu0 %v1223_v10  ;;  %1188 = vmatpush1.bf16.msra.mxu1 %v1223_v10 }
  0x25   : > { %677 = vmatprep.subr.bf16.mxu0 %v1334_v1  ;;  %1179 = vmatprep.subr.bf16.mxu1 %v1334_v1 }
  0x28   : > { %678 = vmatpush1.bf16.msra.mxu0 %v1224_v11  ;;  %1189 = vmatpush1.bf16.msra.mxu1 %v1224_v11 }
  0x29   : > { %679 = vmatprep.subr.bf16.mxu0 %v1334_v1  ;;  %1180 = vmatprep.subr.bf16.mxu1 %v1334_v1  ;;  %v1306_v1 = vld [vmem:[%s1385_s23 + $0x1b4] ss:$8 sps:$4 sm:$0xff]  }
  0x2c   : > { %680 = vmatpush1.bf16.msra.mxu0 %v659_v13  ;;  %1190 = vmatpush1.bf16.msra.mxu1 %v659_v13 }
  0x2f   : > { %694 = vmatmul.mubr.bf16.vlgmr.msra.gmra.mrb[0].mxu0 %v1226_v14  ;;  %806 = vmatmul.mubr.bf16.vlgmr.msra.gmra.mrb[0].mxu1 %v1229_v15 }
  0x30   : > { %1141 = vmatprep.mubr.msk.bf16.mxu0 %vm572_vm0, %v1232_v16  ;;  %1155 = vmatprep.mubr.msk.bf16.mxu1 %vm572_vm0, %v1234_v17 }
  0x37   : > { %702 = vmatmul.mubr.bf16.gmra.mrb[4].mxu0 %v1236_v18  ;;  %814 = vmatmul.mubr.bf16.gmra.mrb[4].mxu1 %v1237_v19 }
  0x38   : > { %1142 = vmatprep.mubr.msk.bf16.mxu0 %vm572_vm0, %v1238_v20  ;;  %1156 = vmatprep.mubr.msk.bf16.mxu1 %vm572_vm0, %v1240_v21 }
  0x3f   : > { %710 = vmatmul.mubr.bf16.gmra.mrb[8].mxu0 %v1242_v22  ;;  %822 = vmatmul.mubr.bf16.gmra.mrb[8].mxu1 %v1243_v23 }
  0x40   : > { %1143 = vmatprep.mubr.msk.bf16.mxu0 %vm572_vm0, %v1244_v24  ;;  %1157 = vmatprep.mubr.msk.bf16.mxu1 %vm572_vm0, %v1246_v25 }
  0x47   : > { %718 = vmatmul.mubr.bf16.gmra.mrb[12].mxu0 %v1248_v26  ;;  %830 = vmatmul.mubr.bf16.gmra.mrb[12].mxu1 %v1249_v27 }
  0x48   : > { %1144 = vmatprep.mubr.msk.bf16.mxu0 %vm572_vm0, %v1250_v28  ;;  %1158 = vmatprep.mubr.msk.bf16.mxu1 %vm572_vm0, %v1252_v29 }
  0x4f   : > { %726 = vmatmul.mubr.bf16.gmra.mrb[16].mxu0 %v1254_v30  ;;  %838 = vmatmul.mubr.bf16.gmra.mrb[16].mxu1 %v1255_v31 }
  0x50   : > { %1145 = vmatprep.mubr.msk.bf16.mxu0 %vm572_vm0, %v1256_v32  ;;  %1159 = vmatprep.mubr.msk.bf16.mxu1 %vm572_vm0, %v1258_v33 }
  0x57   : > { %734 = vmatmul.mubr.bf16.gmra.mrb[20].mxu0 %v1260_v34  ;;  %846 = vmatmul.mubr.bf16.gmra.mrb[20].mxu1 %v1261_v35 }
  0x58   : > { %1146 = vmatprep.mubr.msk.bf16.mxu0 %vm572_vm0, %v1262_v36  ;;  %1160 = vmatprep.mubr.msk.bf16.mxu1 %vm572_vm0, %v1264_v37 }
  0x5f   : > { %742 = vmatmul.mubr.bf16.gmra.mrb[24].mxu0 %v1266_v38  ;;  %854 = vmatmul.mubr.bf16.gmra.mrb[24].mxu1 %v1267_v39 }
  0x60   : > { %1147 = vmatprep.mubr.msk.bf16.mxu0 %vm572_vm0, %v1268_v40  ;;  %1161 = vmatprep.mubr.msk.bf16.mxu1 %vm572_vm0, %v1270_v41 }
  0x67   : > { %750 = vmatmul.mubr.bf16.gmra.mrb[28].mxu0 %v1272_v42  ;;  %862 = vmatmul.mubr.bf16.gmra.mrb[28].mxu1 %v1273_v43 }
  0x68   : > { %1148 = vmatprep.mubr.msk.bf16.mxu0 %vm572_vm0, %v1274_v44  ;;  %1162 = vmatprep.mubr.msk.bf16.mxu1 %vm572_vm0, %v1276_v45 }
  0x6f   : > { %758 = vmatmul.mubr.bf16.gmra.mrb[32].mxu0 %v1278_v46  ;;  %870 = vmatmul.mubr.bf16.gmra.mrb[32].mxu1 %v1279_v47 }
  0x70   : > { %1149 = vmatprep.mubr.msk.bf16.mxu0 %vm572_vm0, %v1280_v48  ;;  %1163 = vmatprep.mubr.msk.bf16.mxu1 %vm572_vm0, %v1282_v49 }
  0x77   : > { %766 = vmatmul.mubr.bf16.gmra.mrb[36].mxu0 %v1284_v50  ;;  %878 = vmatmul.mubr.bf16.gmra.mrb[36].mxu1 %v1285_v51 }
  0x78   : > { %1150 = vmatprep.mubr.msk.bf16.mxu0 %vm572_vm0, %v1286_v52  ;;  %1164 = vmatprep.mubr.msk.bf16.mxu1 %vm572_vm0, %v1288_v53 }
  0x7f   : > { %774 = vmatmul.mubr.bf16.gmra.mrb[40].mxu0 %v1290_v54  ;;  %886 = vmatmul.mubr.bf16.gmra.mrb[40].mxu1 %v1291_v55 }
  0x80   : > { %1151 = vmatprep.mubr.msk.bf16.mxu0 %vm572_vm0, %v1292_v56  ;;  %1165 = vmatprep.mubr.msk.bf16.mxu1 %vm572_vm0, %v1294_v57 }
  0x87   : > { %782 = vmatmul.mubr.bf16.gmra.mrb[44].mxu0 %v1296_v58  ;;  %894 = vmatmul.mubr.bf16.gmra.mrb[44].mxu1 %v1297_v59 }
  0x88   : > { %1152 = vmatprep.mubr.msk.bf16.mxu0 %vm572_vm0, %v1298_v60  ;;  %1166 = vmatprep.mubr.msk.bf16.mxu1 %vm572_vm0, %v1300_v61 }
  0x8f   : > { %790 = vmatmul.mubr.bf16.gmra.mrb[48].mxu0 %v1302_v62  ;;  %902 = vmatmul.mubr.bf16.gmra.mrb[48].mxu1 %v1303_v63 }
  0x90   : > { %1153 = vmatprep.mubr.msk.bf16.mxu0 %vm572_vm0, %v1304_v0  ;;  %1167 = vmatprep.mubr.msk.bf16.mxu1 %vm572_vm0, %v1306_v1 }
  0x97   : > { %798 = vmatmul.mubr.bf16.gmra.mrb[52].mxu0 %v1308_v2  ;;  %910 = vmatmul.mubr.bf16.gmra.mrb[52].mxu1 %v1309_v3 }
 0x102   : > { %v695_v4 = vpop.f32.mrb[0].mxu0  ;;  %v807_v5 = vpop.f32.mrb[0].mxu1 }
 0x103   : > { %919 = vst.msk [vmem:[%s1497_s15] sm:$0xff] %vm918_vm2, %v695_v4  ;;  %947 = vst.msk [vmem:[%s1497_s15 + $0xe0] sm:$0xff] %vm918_vm2, %v807_v5  ;;  %v697_v6 = vpop.f32.mrb[1].mxu0  ;;  %v809_v7 = vpop.f32.mrb[1].mxu1 }
 0x104   : > { %v698_v8 = vpop.f32.mrb[2].mxu0  ;;  %v810_v9 = vpop.f32.mrb[2].mxu1 }
 0x105   : > { %920 = vst.msk [vmem:[%s1497_s15 + $0x8] sm:$0xff] %vm918_vm2, %v698_v8  ;;  %948 = vst.msk [vmem:[%s1497_s15 + $0xe8] sm:$0xff] %vm918_vm2, %v810_v9  ;;  %v700_v10 = vpop.f32.mrb[3].mxu0  ;;  %v812_v11 = vpop.f32.mrb[3].mxu1 }
 0x10a   : > { %v703_v12 = vpop.f32.mrb[4].mxu0  ;;  %v815_v13 = vpop.f32.mrb[4].mxu1 }
 0x10b   : > { %921 = vst.msk [vmem:[%s1497_s15 + $0x10] sm:$0xff] %vm918_vm2, %v703_v12  ;;  %949 = vst.msk [vmem:[%s1497_s15 + $0xf0] sm:$0xff] %vm918_vm2, %v815_v13  ;;  %v705_v14 = vpop.f32.mrb[5].mxu0  ;;  %v817_v15 = vpop.f32.mrb[5].mxu1 }
 0x10c   : > { %v706_v16 = vpop.f32.mrb[6].mxu0  ;;  %v818_v17 = vpop.f32.mrb[6].mxu1 }
 0x10d   : > { %922 = vst.msk [vmem:[%s1497_s15 + $0x18] sm:$0xff] %vm918_vm2, %v706_v16  ;;  %950 = vst.msk [vmem:[%s1497_s15 + $0xf8] sm:$0xff] %vm918_vm2, %v818_v17  ;;  %v708_v18 = vpop.f32.mrb[7].mxu0  ;;  %v820_v19 = vpop.f32.mrb[7].mxu1 }
 0x112   : > { %v711_v20 = vpop.f32.mrb[8].mxu0  ;;  %v823_v21 = vpop.f32.mrb[8].mxu1 }
 0x113   : > { %923 = vst.msk [vmem:[%s1497_s15 + $0x20] sm:$0xff] %vm918_vm2, %v711_v20  ;;  %951 = vst.msk [vmem:[%s1497_s15 + $0x100] sm:$0xff] %vm918_vm2, %v823_v21  ;;  %v713_v22 = vpop.f32.mrb[9].mxu0  ;;  %v825_v23 = vpop.f32.mrb[9].mxu1 }
 0x114   : > { %v714_v24 = vpop.f32.mrb[10].mxu0  ;;  %v826_v25 = vpop.f32.mrb[10].mxu1 }
 0x115   : > { %924 = vst.msk [vmem:[%s1497_s15 + $0x28] sm:$0xff] %vm918_vm2, %v714_v24  ;;  %952 = vst.msk [vmem:[%s1497_s15 + $0x108] sm:$0xff] %vm918_vm2, %v826_v25  ;;  %v716_v26 = vpop.f32.mrb[11].mxu0  ;;  %v828_v27 = vpop.f32.mrb[11].mxu1 }
 0x11a   : > { %v719_v28 = vpop.f32.mrb[12].mxu0  ;;  %v831_v29 = vpop.f32.mrb[12].mxu1 }
 0x11b   : > { %925 = vst.msk [vmem:[%s1497_s15 + $0x30] sm:$0xff] %vm918_vm2, %v719_v28  ;;  %953 = vst.msk [vmem:[%s1497_s15 + $0x110] sm:$0xff] %vm918_vm2, %v831_v29  ;;  %v721_v30 = vpop.f32.mrb[13].mxu0  ;;  %v833_v31 = vpop.f32.mrb[13].mxu1 }
 0x11c   : > { %v722_v32 = vpop.f32.mrb[14].mxu0  ;;  %v834_v33 = vpop.f32.mrb[14].mxu1 }
 0x11d   : > { %926 = vst.msk [vmem:[%s1497_s15 + $0x38] sm:$0xff] %vm918_vm2, %v722_v32  ;;  %954 = vst.msk [vmem:[%s1497_s15 + $0x118] sm:$0xff] %vm918_vm2, %v834_v33  ;;  %v724_v34 = vpop.f32.mrb[15].mxu0  ;;  %v836_v35 = vpop.f32.mrb[15].mxu1 }
 0x122   : > { %v727_v36 = vpop.f32.mrb[16].mxu0  ;;  %v839_v37 = vpop.f32.mrb[16].mxu1 }
 0x123   : > { %927 = vst.msk [vmem:[%s1497_s15 + $0x40] sm:$0xff] %vm918_vm2, %v727_v36  ;;  %955 = vst.msk [vmem:[%s1497_s15 + $0x120] sm:$0xff] %vm918_vm2, %v839_v37  ;;  %v729_v38 = vpop.f32.mrb[17].mxu0  ;;  %v841_v39 = vpop.f32.mrb[17].mxu1 }
 0x124   : > { %v730_v40 = vpop.f32.mrb[18].mxu0  ;;  %v842_v41 = vpop.f32.mrb[18].mxu1 }
 0x125   : > { %928 = vst.msk [vmem:[%s1497_s15 + $0x48] sm:$0xff] %vm918_vm2, %v730_v40  ;;  %956 = vst.msk [vmem:[%s1497_s15 + $0x128] sm:$0xff] %vm918_vm2, %v842_v41  ;;  %v732_v42 = vpop.f32.mrb[19].mxu0  ;;  %v844_v43 = vpop.f32.mrb[19].mxu1 }
 0x12a   : > { %v735_v44 = vpop.f32.mrb[20].mxu0  ;;  %v847_v45 = vpop.f32.mrb[20].mxu1 }
 0x12b   : > { %929 = vst.msk [vmem:[%s1497_s15 + $0x50] sm:$0xff] %vm918_vm2, %v735_v44  ;;  %957 = vst.msk [vmem:[%s1497_s15 + $0x130] sm:$0xff] %vm918_vm2, %v847_v45  ;;  %v737_v46 = vpop.f32.mrb[21].mxu0  ;;  %v849_v47 = vpop.f32.mrb[21].mxu1 }
 0x12c   : > { %v738_v48 = vpop.f32.mrb[22].mxu0  ;;  %v850_v49 = vpop.f32.mrb[22].mxu1 }
 0x12d   : > { %930 = vst.msk [vmem:[%s1497_s15 + $0x58] sm:$0xff] %vm918_vm2, %v738_v48  ;;  %958 = vst.msk [vmem:[%s1497_s15 + $0x138] sm:$0xff] %vm918_vm2, %v850_v49  ;;  %v740_v50 = vpop.f32.mrb[23].mxu0  ;;  %v852_v51 = vpop.f32.mrb[23].mxu1 }
 0x132   : > { %v743_v52 = vpop.f32.mrb[24].mxu0  ;;  %v855_v53 = vpop.f32.mrb[24].mxu1 }
 0x133   : > { %931 = vst.msk [vmem:[%s1497_s15 + $0x60] sm:$0xff] %vm918_vm2, %v743_v52  ;;  %959 = vst.msk [vmem:[%s1497_s15 + $0x140] sm:$0xff] %vm918_vm2, %v855_v53  ;;  %v745_v54 = vpop.f32.mrb[25].mxu0  ;;  %v857_v55 = vpop.f32.mrb[25].mxu1 }
 0x134   : > { %v746_v56 = vpop.f32.mrb[26].mxu0  ;;  %v858_v57 = vpop.f32.mrb[26].mxu1 }
 0x135   : > { %932 = vst.msk [vmem:[%s1497_s15 + $0x68] sm:$0xff] %vm918_vm2, %v746_v56  ;;  %960 = vst.msk [vmem:[%s1497_s15 + $0x148] sm:$0xff] %vm918_vm2, %v858_v57  ;;  %v748_v58 = vpop.f32.mrb[27].mxu0  ;;  %v860_v59 = vpop.f32.mrb[27].mxu1 }
 0x13a   : > { %v751_v60 = vpop.f32.mrb[28].mxu0  ;;  %v863_v61 = vpop.f32.mrb[28].mxu1 }
 0x13b   : > { %933 = vst.msk [vmem:[%s1497_s15 + $0x70] sm:$0xff] %vm918_vm2, %v751_v60  ;;  %961 = vst.msk [vmem:[%s1497_s15 + $0x150] sm:$0xff] %vm918_vm2, %v863_v61  ;;  %v753_v62 = vpop.f32.mrb[29].mxu0  ;;  %v865_v63 = vpop.f32.mrb[29].mxu1 }
 0x13c   : > { %v754_v0 = vpop.f32.mrb[30].mxu0  ;;  %v866_v1 = vpop.f32.mrb[30].mxu1 }
 0x13d   : > { %934 = vst.msk [vmem:[%s1497_s15 + $0x78] sm:$0xff] %vm918_vm2, %v754_v0  ;;  %962 = vst.msk [vmem:[%s1497_s15 + $0x158] sm:$0xff] %vm918_vm2, %v866_v1  ;;  %v756_v2 = vpop.f32.mrb[31].mxu0  ;;  %v868_v3 = vpop.f32.mrb[31].mxu1 }
 0x142   : > { %v759_v4 = vpop.f32.mrb[32].mxu0  ;;  %v871_v5 = vpop.f32.mrb[32].mxu1 }
 0x143   : > { %935 = vst.msk [vmem:[%s1497_s15 + $0x80] sm:$0xff] %vm918_vm2, %v759_v4  ;;  %963 = vst.msk [vmem:[%s1497_s15 + $0x160] sm:$0xff] %vm918_vm2, %v871_v5  ;;  %v761_v6 = vpop.f32.mrb[33].mxu0  ;;  %v873_v7 = vpop.f32.mrb[33].mxu1 }
 0x144   : > { %v762_v8 = vpop.f32.mrb[34].mxu0  ;;  %v874_v9 = vpop.f32.mrb[34].mxu1 }
 0x145   : > { %936 = vst.msk [vmem:[%s1497_s15 + $0x88] sm:$0xff] %vm918_vm2, %v762_v8  ;;  %964 = vst.msk [vmem:[%s1497_s15 + $0x168] sm:$0xff] %vm918_vm2, %v874_v9  ;;  %v764_v10 = vpop.f32.mrb[35].mxu0  ;;  %v876_v11 = vpop.f32.mrb[35].mxu1 }
 0x14a   : > { %v767_v12 = vpop.f32.mrb[36].mxu0  ;;  %v879_v13 = vpop.f32.mrb[36].mxu1 }
 0x14b   : > { %937 = vst.msk [vmem:[%s1497_s15 + $0x90] sm:$0xff] %vm918_vm2, %v767_v12  ;;  %965 = vst.msk [vmem:[%s1497_s15 + $0x170] sm:$0xff] %vm918_vm2, %v879_v13  ;;  %v769_v14 = vpop.f32.mrb[37].mxu0  ;;  %v881_v15 = vpop.f32.mrb[37].mxu1 }
 0x14c   : > { %v770_v16 = vpop.f32.mrb[38].mxu0  ;;  %v882_v17 = vpop.f32.mrb[38].mxu1 }
 0x14d   : > { %938 = vst.msk [vmem:[%s1497_s15 + $0x98] sm:$0xff] %vm918_vm2, %v770_v16  ;;  %966 = vst.msk [vmem:[%s1497_s15 + $0x178] sm:$0xff] %vm918_vm2, %v882_v17  ;;  %v772_v18 = vpop.f32.mrb[39].mxu0  ;;  %v884_v19 = vpop.f32.mrb[39].mxu1 }
 0x152   : > { %v775_v20 = vpop.f32.mrb[40].mxu0  ;;  %v887_v21 = vpop.f32.mrb[40].mxu1 }
 0x153   : > { %939 = vst.msk [vmem:[%s1497_s15 + $0xa0] sm:$0xff] %vm918_vm2, %v775_v20  ;;  %967 = vst.msk [vmem:[%s1497_s15 + $0x180] sm:$0xff] %vm918_vm2, %v887_v21  ;;  %v777_v22 = vpop.f32.mrb[41].mxu0  ;;  %v889_v23 = vpop.f32.mrb[41].mxu1 }
 0x154   : > { %v778_v24 = vpop.f32.mrb[42].mxu0  ;;  %v890_v25 = vpop.f32.mrb[42].mxu1 }
 0x155   : > { %940 = vst.msk [vmem:[%s1497_s15 + $0xa8] sm:$0xff] %vm918_vm2, %v778_v24  ;;  %968 = vst.msk [vmem:[%s1497_s15 + $0x188] sm:$0xff] %vm918_vm2, %v890_v25  ;;  %v780_v26 = vpop.f32.mrb[43].mxu0  ;;  %v892_v27 = vpop.f32.mrb[43].mxu1 }
 0x15a   : > { %v783_v28 = vpop.f32.mrb[44].mxu0  ;;  %v895_v29 = vpop.f32.mrb[44].mxu1 }
 0x15b   : > { %941 = vst.msk [vmem:[%s1497_s15 + $0xb0] sm:$0xff] %vm918_vm2, %v783_v28  ;;  %969 = vst.msk [vmem:[%s1497_s15 + $0x190] sm:$0xff] %vm918_vm2, %v895_v29  ;;  %v785_v30 = vpop.f32.mrb[45].mxu0  ;;  %v897_v31 = vpop.f32.mrb[45].mxu1 }
 0x15c   : > { %v786_v32 = vpop.f32.mrb[46].mxu0  ;;  %v898_v33 = vpop.f32.mrb[46].mxu1 }
 0x15d   : > { %942 = vst.msk [vmem:[%s1497_s15 + $0xb8] sm:$0xff] %vm918_vm2, %v786_v32  ;;  %970 = vst.msk [vmem:[%s1497_s15 + $0x198] sm:$0xff] %vm918_vm2, %v898_v33  ;;  %v788_v34 = vpop.f32.mrb[47].mxu0  ;;  %v900_v35 = vpop.f32.mrb[47].mxu1 }
 0x162   : > { %v791_v36 = vpop.f32.mrb[48].mxu0  ;;  %v903_v37 = vpop.f32.mrb[48].mxu1 }
 0x163   : > { %943 = vst.msk [vmem:[%s1497_s15 + $0xc0] sm:$0xff] %vm918_vm2, %v791_v36  ;;  %971 = vst.msk [vmem:[%s1497_s15 + $0x1a0] sm:$0xff] %vm918_vm2, %v903_v37  ;;  %v793_v38 = vpop.f32.mrb[49].mxu0  ;;  %v905_v39 = vpop.f32.mrb[49].mxu1 }
 0x164   : > { %v794_v40 = vpop.f32.mrb[50].mxu0  ;;  %v906_v41 = vpop.f32.mrb[50].mxu1 }
 0x165   : > { %944 = vst.msk [vmem:[%s1497_s15 + $0xc8] sm:$0xff] %vm918_vm2, %v794_v40  ;;  %972 = vst.msk [vmem:[%s1497_s15 + $0x1a8] sm:$0xff] %vm918_vm2, %v906_v41  ;;  %v796_v42 = vpop.f32.mrb[51].mxu0  ;;  %v908_v43 = vpop.f32.mrb[51].mxu1 }
 0x16a   : > { %v799_v44 = vpop.f32.mrb[52].mxu0  ;;  %v911_v45 = vpop.f32.mrb[52].mxu1 }
 0x16b   : > { %945 = vst.msk [vmem:[%s1497_s15 + $0xd0] sm:$0xff] %vm918_vm2, %v799_v44  ;;  %973 = vst.msk [vmem:[%s1497_s15 + $0x1b0] sm:$0xff] %vm918_vm2, %v911_v45  ;;  %v801_v46 = vpop.f32.mrb[53].mxu0  ;;  %v913_v47 = vpop.f32.mrb[53].mxu1 }
 0x16c   : > { %v802_v48 = vpop.f32.mrb[54].mxu0  ;;  %v914_v49 = vpop.f32.mrb[54].mxu1 }
 0x16d   : > { %946 = vst.msk [vmem:[%s1497_s15 + $0xd8] sm:$0xff] %vm918_vm2, %v802_v48  ;;  %974 = vst.msk [vmem:[%s1497_s15 + $0x1b8] sm:$0xff] %vm918_vm2, %v914_v49  ;;  %v804_v50 = vpop.f32.mrb[55].mxu0  ;;  %v916_v51 = vpop.f32.mrb[55].mxu1 }
 0x16e PF: > { %s12_s11 = sadd.s32 1, %s1332_s11   ;;  %s1623_s9 = smov %s1328_s10 }
 0x16f   : > { %p9_p5 = scmp.ge.s32.totalorder %s12_s11, 30   ;;  %s1624_s10 = smov %s1626_s12 }
 0x171   :  { %11 = sbr.rel (!%p9_p5) target bundleno = 2 (0x2), region = 61 }

</bundles_post_ra>
